<compile_context>
chip_gen: v7x
topology: tpu7x:2x2x1
jax: 0.10.0
libtpu: 0.0.40
codegen_flags: <defaults>
</compile_context>

<pallas_src>
import jax
import jax.numpy as jnp
from jax.experimental import pallas as pl
from jax.experimental.pallas import tpu as pltpu

NEG_SLOPE = 0.1


def _round_up(x, m):
    return (x + m - 1) // m * m


def _leaky_relu(y):
    # For slope < 1: max(y, slope*y) == LeakyReLU(slope).
    return jnp.maximum(y, NEG_SLOPE * y)


# --------------------------------------------------------------------------
# Kernels
# --------------------------------------------------------------------------
def _mlp_kernel_acc(x_ref, w_ref, b_ref, o_ref, acc_ref):
    """Non-f32 output: f32 VMEM accumulator, cast + activation in epilogue."""
    k = pl.program_id(2)

    @pl.when(k == 0)
    def _():
        acc_ref[...] = jnp.zeros_like(acc_ref)

    acc_ref[...] += jnp.dot(x_ref[...], w_ref[...],
                            preferred_element_type=jnp.float32)

    @pl.when(k == pl.num_programs(2) - 1)
    def _():
        y = acc_ref[...] + b_ref[...].astype(jnp.float32)
        o_ref[...] = _leaky_relu(y).astype(o_ref.dtype)


def _mlp_kernel_f32(x_ref, w_ref, b_ref, o_ref):
    """f32 output: accumulate directly into the VMEM-resident output tile."""
    k = pl.program_id(2)

    @pl.when(k == 0)
    def _():
        o_ref[...] = jnp.zeros_like(o_ref)

    o_ref[...] += jnp.dot(x_ref[...], w_ref[...],
                          preferred_element_type=jnp.float32)

    @pl.when(k == pl.num_programs(2) - 1)
    def _():
        y = o_ref[...] + b_ref[...].astype(jnp.float32)
        o_ref[...] = _leaky_relu(y)


# --------------------------------------------------------------------------
# Tile selection (generation-aware)
# --------------------------------------------------------------------------
def _device_kind():
    try:
        return jax.devices()[0].device_kind.lower()
    except Exception:  # pragma: no cover - CPU/interpret fallbacks
        return ""


def _default_tiles(device_kind):
    """Returns (tm, tn, tk, vmem_limit_cap_bytes)."""
    dk = device_kind
    if "v7" in dk:
        # 64 MiB VMEM / TC; per-TC HBM ~1.6 TB/s vs ~500 TF/s -> T~768-1024
        # already compute-bound.  Don't copy a v6e 1536-f32 config here.
        return 1024, 1024, 512, 56 << 20
    if "v6" in dk:
        # v6e needs ~656 FLOP/byte to be MXU-bound -> large output tiles;
        # tk=1024 halves accumulator RMW traffic vs 512.
        return 1280, 1280, 1024, 100 << 20
    if "v5" in dk and ("lite" in dk or "5e" in dk):
        # v5e: T=512 already past the ~240 FLOP/B crossover; bigger tiles only
        # burn scoped VMEM.  Raise tk instead to relieve the single vst slot.
        return 512, 512, 1024, 100 << 20
    return 512, 512, 512, 100 << 20


# --------------------------------------------------------------------------
# Parameter preparation (one-time, at load): transpose + cast + pad weights.
# --------------------------------------------------------------------------
def prepare_mlp_params(weight, bias, *, compute_dtype=None, out_dtype=None,
                       tiles=None):
    """weight: [n_out, n_in] (PyTorch layout), bias: [n_out]."""
    n_out, n_in = weight.shape
    assert bias.shape == (n_out,)

    compute_dtype = jnp.dtype(compute_dtype or weight.dtype)
    out_dtype = jnp.dtype(out_dtype or compute_dtype)

    tm_d, tn_d, tk_d, vmem_cap = _default_tiles(_device_kind())
    if tiles is not None:
        tm_d, tn_d, tk_d = tiles

    # Clamp lane-axis tiles to the (padded) problem, staying 128-aligned.
    tn = min(tn_d, _round_up(n_out, 128))
    tk = min(tk_d, _round_up(n_in, 128))
    Np = _round_up(n_out, tn)
    Kp = _round_up(n_in, tk)

    # One-time transpose + cast + zero-pad (exact: padded K rows contribute 0,
    # padded N cols are sliced off in the wrapper).
    w_t = jnp.asarray(weight, compute_dtype).T            # [n_in, n_out]
    if (Kp, Np) != (n_in, n_out):
        w_t = jnp.pad(w_t, ((0, Kp - n_in), (0, Np - n_out)))
    b2 = jnp.asarray(bias, jnp.float32).reshape(1, n_out)
    if Np != n_out:
        b2 = jnp.pad(b2, ((0, 0), (0, Np - n_out)))

    return dict(w_t=w_t, b2=b2, n_in=n_in, n_out=n_out,
                tm_default=tm_d, tn=tn, tk=tk,
                compute_dtype=compute_dtype, out_dtype=out_dtype,
                vmem_cap=vmem_cap)


# --------------------------------------------------------------------------
# Forward
# --------------------------------------------------------------------------
def mlp_forward(x, params):
    """y = LeakyReLU_0.1(x @ W^T + b); Dropout(p=0) is the identity."""
    w_t, b2 = params["w_t"], params["b2"]
    n_in, n_out = params["n_in"], params["n_out"]
    tn, tk = params["tn"], params["tk"]
    cdtype, odtype = params["compute_dtype"], params["out_dtype"]

    lead = x.shape[:-1]
    assert x.shape[-1] == n_in
    x2 = x.reshape(-1, n_in).astype(cdtype)
    M = x2.shape[0]
    Kp, Np = w_t.shape

    # Sublane multiple follows operand packing: 8 (f32) / 16 (bf16) / 32 (8b).
    sub = max(8, 32 // max(1, cdtype.itemsize))
    tm = min(params["tm_default"], _round_up(M, sub))
    Mp = _round_up(M, tm)

    # Megacore (v7x): if the M axis has a single block, make sure the N axis
    # still exposes >= 2 parallel blocks so the second TensorCore has work.
    if Mp // tm == 1:
        while Np // tn < 2 and tn % 256 == 0:
            tn //= 2

    # Only x ever needs per-call padding (weights/bias padded at load time).
    if (Mp, Kp) != (M, n_in):
        x2 = jnp.pad(x2, ((0, Mp - M), (0, Kp - n_in)))

    grid = (Mp // tm, Np // tn, Kp // tk)

    use_scratch = odtype != jnp.dtype(jnp.float32)
    kernel = _mlp_kernel_acc if use_scratch else _mlp_kernel_f32
    scratch = [pltpu.VMEM((tm, tn), jnp.float32)] if use_scratch else []

    in_b = cdtype.itemsize
    out_b = odtype.itemsize
    # acc + double-buffered x / w / out tiles + bias, with headroom.
    vmem_need = (2 * (tm * tk + tk * tn) * in_b
                 + 2 * tm * tn * out_b
                 + (tm * tn * 4 if use_scratch else 0)
                 + 2 * tn * 4)
    vmem_limit = min(max(int(vmem_need * 1.4) + (1 << 20), 32 << 20),
                     params["vmem_cap"])

    cost = pl.CostEstimate(
        flops=2 * Mp * Np * Kp,
        transcendentals=0,
        bytes_accessed=(Mp * Kp * in_b * (Np // tn)      # x re-read per N tile
                        + Kp * Np * in_b * (Mp // tm)    # w re-read per M tile
                        + Np * 4 + Mp * Np * out_b),
    )

    out = pl.pallas_call(
        kernel,
        out_shape=jax.ShapeDtypeStruct((Mp, Np), odtype),
        grid_spec=pltpu.PrefetchScalarGridSpec(
            num_scalar_prefetch=0,
            grid=grid,
            in_specs=[
                pl.BlockSpec((tm, tk), lambda i, j, k: (i, k)),
                pl.BlockSpec((tk, tn), lambda i, j, k: (k, j)),
                pl.BlockSpec((1, tn), lambda i, j, k: (0, j)),
            ],
            out_specs=pl.BlockSpec((tm, tn), lambda i, j, k: (i, j)),
            scratch_shapes=scratch,
        ),
        compiler_params=pltpu.CompilerParams(
            dimension_semantics=("parallel", "parallel", "arbitrary"),
            vmem_limit_bytes=vmem_limit,
        ),
        cost_estimate=cost,
    )(x2, w_t, b2)

    if (Mp, Np) != (M, n_out):
        out = out[:M, :n_out]     # no-op copy avoided when tiles divide M/N
    return out.reshape(*lead, n_out)


# --------------------------------------------------------------------------
# Demo / correctness check
# --------------------------------------------------------------------------
if __name__ == "__main__":
    key = jax.random.PRNGKey(0)
    k_x, k_w, k_b = jax.random.split(key, 3)

    batch, n_in, n_out = 16, 32, 64

    # PyTorch nn.Linear-style uniform init (bound = 1/sqrt(n_in)).
    bound = 1.0 / (n_in ** 0.5)
    weight = jax.random.uniform(k_w, (n_out, n_in), jnp.float32, -bound, bound)
    bias = jax.random.uniform(k_b, (n_out,), jnp.float32, -bound, bound)
    x = jax.random.normal(k_x, (batch, n_in), jnp.float32)

    # Plain-JAX reference.
    ref = x @ weight.T + bias[None, :]
    ref = jnp.where(ref > 0, ref, NEG_SLOPE * ref)

    # f32 path (accumulates directly into the output tile, no scratch).
    params_f32 = prepare_mlp_params(weight, bias)          # one-time prep
    out_f32 = jax.block_until_ready(mlp_forward(x, params_f32))
    assert out_f32.shape == (batch, n_out)
    assert jnp.allclose(out_f32, ref, atol=1e-5, rtol=1e-5)

    # bf16 compute path (recommended for real workloads: 2-4x MXU throughput,
    # half the HBM traffic; f32 accumulation on the MXU, f32 scratch epilogue).
    params_bf16 = prepare_mlp_params(weight, bias,
                                     compute_dtype=jnp.bfloat16,
                                     out_dtype=jnp.bfloat16)
    out_bf16 = jax.block_until_ready(mlp_forward(x, params_bf16))
    assert out_bf16.shape == (batch, n_out)
    assert jnp.allclose(out_bf16.astype(jnp.float32), ref,
                        atol=3e-2, rtol=3e-2)

    print("KERNEL_OK")
</pallas_src>

<mosaic_0001>
module attributes {stable_mosaic.version = 11 : i64} {
  func.func @_mlp_kernel_f32(%arg0: i32, %arg1: i32, %arg2: i32, %arg3: memref<16x128xf32, #tpu.memory_space<vmem>>, %arg4: memref<128x128xf32, #tpu.memory_space<vmem>>, %arg5: memref<1x128xf32, #tpu.memory_space<vmem>>, %arg6: memref<16x128xf32, #tpu.memory_space<vmem>>) attributes {dimension_semantics = [#tpu.dimension_semantics<parallel>, #tpu.dimension_semantics<parallel>, #tpu.dimension_semantics<arbitrary>], iteration_bounds = array<i64: 1, 1, 1>, scalar_prefetch = 0 : i64, scratch_operands = 0 : i64, tpu.core_type = #tpu.core_type<tc>, window_params = [{transform_indices = @transform_0, window_bounds = array<i64: 16, 128>}, {transform_indices = @transform_1, window_bounds = array<i64: 128, 128>}, {transform_indices = @transform_2, window_bounds = array<i64: 1, 128>}, {transform_indices = @transform_3, window_bounds = array<i64: 16, 128>}]} {
    %c0_i32 = arith.constant 0 : i32
    %0 = arith.cmpi eq, %arg2, %c0_i32 : i32
    %1 = arith.extui %0 : i1 to i32
    %c0_i32_0 = arith.constant 0 : i32
    %2 = arith.cmpi ne, %1, %c0_i32_0 : i32
    scf.if %2 {
      %cst_10 = arith.constant 0.000000e+00 : f32
      %12 = vector.broadcast %cst_10 : f32 to vector<16x128xf32>
      %c0_11 = arith.constant 0 : index
      %c0_12 = arith.constant 0 : index
      %13 = vector.load %arg6[%c0_11, %c0_12] : memref<16x128xf32, #tpu.memory_space<vmem>>, vector<16x128xf32>
      tpu.vector_store %arg6[%c0_11, %c0_12], %12 {strides = array<i32>} : memref<16x128xf32, #tpu.memory_space<vmem>>, vector<16x128xf32>,
    } else {
    }
    %c0 = arith.constant 0 : index
    %c0_1 = arith.constant 0 : index
    %3 = vector.load %arg6[%c0, %c0_1] : memref<16x128xf32, #tpu.memory_space<vmem>>, vector<16x128xf32>
    %c0_2 = arith.constant 0 : index
    %c0_3 = arith.constant 0 : index
    %4 = vector.load %arg3[%c0_2, %c0_3] : memref<16x128xf32, #tpu.memory_space<vmem>>, vector<16x128xf32>
    %c0_4 = arith.constant 0 : index
    %c0_5 = arith.constant 0 : index
    %5 = vector.load %arg4[%c0_4, %c0_5] : memref<128x128xf32, #tpu.memory_space<vmem>>, vector<128x128xf32>
    %cst = arith.constant dense<0.000000e+00> : vector<16x128xf32>
    %6 = tpu.matmul %4, %5, %cst {dimension_numbers = #tpu.dot_dimension_numbers<[1], [0], [0], [1], [0, 0, 1, 1], [], []>} : vector<16x128xf32>, vector<128x128xf32>, vector<16x128xf32> -> vector<16x128xf32>
    %7 = arith.addf %3, %6 : vector<16x128xf32>
    %c0_6 = arith.constant 0 : index
    %c0_7 = arith.constant 0 : index
    %8 = vector.load %arg6[%c0_6, %c0_7] : memref<16x128xf32, #tpu.memory_space<vmem>>, vector<16x128xf32>
    tpu.vector_store %arg6[%c0_6, %c0_7], %7 {strides = array<i32>} : memref<16x128xf32, #tpu.memory_space<vmem>>, vector<16x128xf32>,
    %c0_i32_8 = arith.constant 0 : i32
    %9 = arith.cmpi eq, %arg2, %c0_i32_8 : i32
    %10 = arith.extui %9 : i1 to i32
    %c0_i32_9 = arith.constant 0 : i32
    %11 = arith.cmpi ne, %10, %c0_i32_9 : i32
    scf.if %11 {
      %c0_10 = arith.constant 0 : index
      %c0_11 = arith.constant 0 : index
      %12 = vector.load %arg6[%c0_10, %c0_11] : memref<16x128xf32, #tpu.memory_space<vmem>>, vector<16x128xf32>
      %c0_12 = arith.constant 0 : index
      %c0_13 = arith.constant 0 : index
      %13 = vector.load %arg5[%c0_12, %c0_13] : memref<1x128xf32, #tpu.memory_space<vmem>>, vector<1x128xf32>
      %14 = vector.broadcast %13 : vector<1x128xf32> to vector<16x128xf32>
      %15 = arith.addf %12, %14 : vector<16x128xf32>
      %cst_14 = arith.constant 1.000000e-01 : f32
      %16 = vector.broadcast %cst_14 : f32 to vector<16x128xf32>
      %17 = arith.mulf %16, %15 : vector<16x128xf32>
      %18 = arith.maximumf %15, %17 : vector<16x128xf32>
      %c0_15 = arith.constant 0 : index
      %c0_16 = arith.constant 0 : index
      %19 = vector.load %arg6[%c0_15, %c0_16] : memref<16x128xf32, #tpu.memory_space<vmem>>, vector<16x128xf32>
      tpu.vector_store %arg6[%c0_15, %c0_16], %18 {strides = array<i32>} : memref<16x128xf32, #tpu.memory_space<vmem>>, vector<16x128xf32>,
    } else {
    }
    return
  }
  func.func @transform_0(%arg0: i32, %arg1: i32, %arg2: i32) -> (i32, i32) {
    %c0_i32 = arith.constant 0 : i32
    return %arg0, %arg2 : i32, i32
  }
  func.func @transform_1(%arg0: i32, %arg1: i32, %arg2: i32) -> (i32, i32) {
    %c0_i32 = arith.constant 0 : i32
    return %arg2, %arg1 : i32, i32
  }
  func.func @transform_2(%arg0: i32, %arg1: i32, %arg2: i32) -> (i32, i32) {
    %c0_i32 = arith.constant 0 : i32
    %c0_i32_0 = arith.constant 0 : i32
    return %c0_i32, %arg1 : i32, i32
  }
  func.func @transform_3(%arg0: i32, %arg1: i32, %arg2: i32) -> (i32, i32) {
    %c0_i32 = arith.constant 0 : i32
    return %arg0, %arg1 : i32, i32
  }
}

</mosaic_0001>

<bundles_post_ra>
// kernel: tpu_custom_call.1
= control target key start
LH: loop header
LB: loop body
LE: loop exit
PB: predicated region body
PF: predicated region fallthrough
CT: control target
= control target key end

     0   :  { %8 = vsyncpa [#allocation3], 0  ;;  %s423_s0 = inlined_call_operand.hbm [shape: f32[16,128], index: 0, kind: input, shape index: {}]   ;;  %s424_s1 = inlined_call_operand.hbm [shape: f32[128,128], index: 1, kind: input, shape index: {}]   ;;  %s425_s2 = inlined_call_operand.vmem [shape: f32[1,128], index: 2, kind: input, shape index: {}]   ;;  %s426_s3 = inlined_call_operand.hbm [shape: f32[16,128], index: 3, kind: output, shape index: {}]  }
   0x1   :  { %9 = vsyncpa [#allocation6], 0 }
   0x2   :  { %10 = vsyncpa [#allocation4], 0  ;;  %s350_s12 = smov [#allocation2]   ;;  %s278_s16 = scalar_lea.hbm %s423_s0, 256 }
   0x3   :  { %s16_s13 = sshll.u32 %s350_s12, 4  ;;  %p279_p0 = scmp.ne.s32.totalorder %s423_s0, %s278_s16  ;;  %s17_s13 = int_to_ptr.vmem [resolvable:$true] %s16_s13 }
   0x4   :  { %p282_p1 = scmp.lt.u32.totalorder %s278_s16, %s423_s0 }
   0x6   :  { %p284_p2 = pnand %p282_p1, %p279_p0 }
   0x8   :  { %287 = shalt.err (!%p284_p2)
}
   0x9   :  { %s288_s21 = scalar_lea.vmem %s17_s13, 256  ;;  %p293_p4 = scmp.lt.s32.totalorder %s17_s13, %s17_s13 }
   0xa   :  { %p289_p3 = scmp.ne.s32.totalorder %s17_s13, %s288_s21  ;;  %p294_p5 = scmp.lt.s32.totalorder %s288_s21, %s288_s21 }
   0xc   :  { %p295_p6 = por %p294_p5, %p293_p4 }
   0xe   :  { %p296_p7 = pnand %p295_p6, %p289_p3 }
  0x10   :  { %299 = shalt.err (!%p296_p7)
}
  0x11   :  { %s351_s22 = smov 128   ;;  %s352_s23 = smov 8  }
  0x12   :  { %22 = dma.hbm_to_vmem [thread:$0]  %s423_s0, 256, %s17_s13, [#allocation3], %s351_s22, %s351_s22, %s352_s23  }
  0x13   :  { %s353_s26 = smov [#allocation5]   ;;  %s300_s30 = scalar_lea.hbm %s424_s1, 2048 }
  0x14   :  { %s28_s27 = sshll.u32 %s353_s26, 4  ;;  %p301_p8 = scmp.ne.s32.totalorder %s424_s1, %s300_s30  ;;  %s29_s27 = int_to_ptr.vmem [resolvable:$true] %s28_s27 }
  0x15   :  { %p304_p9 = scmp.lt.u32.totalorder %s300_s30, %s424_s1 }
  0x17   :  { %p306_p10 = pnand %p304_p9, %p301_p8 }
  0x19   :  { %309 = shalt.err (!%p306_p10)
}
  0x1a   :  { %s310_s8 = scalar_lea.vmem %s29_s27, 2048  ;;  %p315_p12 = scmp.lt.s32.totalorder %s29_s27, %s29_s27 }
  0x1b   :  { %p311_p11 = scmp.ne.s32.totalorder %s29_s27, %s310_s8  ;;  %p316_p13 = scmp.lt.s32.totalorder %s310_s8, %s310_s8 }
  0x1d   :  { %p317_p0 = por %p316_p13, %p315_p12 }
  0x1f   :  { %p318_p1 = pnand %p317_p0, %p311_p11 }
  0x21   :  { %321 = shalt.err (!%p318_p1)
}
  0x22   :  { %34 = dma.hbm_to_vmem [thread:$0]  %s424_s1, 2048, %s29_s27, [#allocation6], %s351_s22, %s351_s22, %s352_s23  }
  0x23   :  { %344 = dma.done.wait [#allocation3], 256  }
  0x24   :  { %345 = vsyncadd [#allocation3], 4294967040 }
  0x25   :  { %346 = dma.done.wait [#allocation6], 2048  }
  0x26   :  { %347 = vsyncadd [#allocation6], 4294965248  ;;  %v53_v0 = vld [vmem:[#allocation5] sm:$0xff]  ;;  %v54_v1 = vld [vmem:[#allocation5 + $0x8] sm:$0xff]  ;;  %s354_s11 = smov [#allocation7]  }
  0x27   :  { %v55_v2 = vld [vmem:[#allocation5 + $0x10] sm:$0xff]  ;;  %v240_v3 = vpack.c.bf16 %v54_v1, %v53_v0  ;;  %v56_v4 = vld [vmem:[#allocation5 + $0x18] sm:$0xff]  ;;  %v57_v6 = vld [vmem:[#allocation5 + $0x20] sm:$0xff]  ;;  %s173_s12 = sshll.u32 %s354_s11, 4  ;;  %s174_s12 = int_to_ptr.vmem [resolvable:$true] %s173_s12 }
  0x28   :  { %v244_v5 = vpack.c.bf16 %v56_v4, %v55_v2  ;;  %v58_v7 = vld [vmem:[#allocation5 + $0x28] sm:$0xff]  ;;  %v51_v9 = vld [vmem:[#allocation2] sm:$0xff]  ;;  %v60_v11 = vld [vmem:[#allocation5 + $0x38] sm:$0xff]  ;;  %s322_s13 = scalar_lea.vmem %s174_s12, 256  ;;  %p327_p3 = scmp.lt.s32.totalorder %s174_s12, %s174_s12 }
  0x29   :  { %241 = vmatprep.subr.bf16.mxu0 %v240_v3  ;;  %v248_v8 = vpack.c.bf16 %v58_v7, %v57_v6  ;;  %v59_v10 = vld [vmem:[#allocation5 + $0x30] sm:$0xff]  ;;  %237 = vmatprep.mubr.f32.mxu0 %v51_v9  ;;  %v61_v13 = vld [vmem:[#allocation5 + $0x40] sm:$0xff]  ;;  %v62_v14 = vld [vmem:[#allocation5 + $0x48] sm:$0xff]  ;;  %p323_p2 = scmp.ne.s32.totalorder %s174_s12, %s322_s13  ;;  %p328_p4 = scmp.lt.s32.totalorder %s322_s13, %s322_s13 }
  0x2a   :  { %243 = vmatpush3.bf16.msra.mxu0 %v240_v3  ;;  %v252_v12 = vpack.c.bf16 %v60_v11, %v59_v10  ;;  %v256_v15 = vpack.c.bf16 %v62_v14, %v61_v13  ;;  %v63_v16 = vld [vmem:[#allocation5 + $0x50] sm:$0xff]  ;;  %v64_v17 = vld [vmem:[#allocation5 + $0x58] sm:$0xff]  ;;  %v65_v19 = vld [vmem:[#allocation5 + $0x60] sm:$0xff] }
  0x2b   :  { %245 = vmatprep.subr.bf16.mxu0 %v244_v5  ;;  %v260_v18 = vpack.c.bf16 %v64_v17, %v63_v16  ;;  %v66_v20 = vld [vmem:[#allocation5 + $0x68] sm:$0xff]  ;;  %v67_v22 = vld [vmem:[#allocation5 + $0x70] sm:$0xff]  ;;  %v68_v23 = vld [vmem:[#allocation5 + $0x78] sm:$0xff]  ;;  %p329_p5 = por %p328_p4, %p327_p3 }
  0x2c   :  { %v264_v21 = vpack.c.bf16 %v66_v20, %v65_v19  ;;  %v268_v24 = vpack.c.bf16 %v68_v23, %v67_v22  ;;  %v52_v25 = vld [vmem:[#allocation2 + $0x8] sm:$0xff]  ;;  %v186_v27 = vld [vmem:[%s425_s2] ss:$0 sm:$0xff] }
  0x2d   :  { %p330_p6 = pnand %p329_p5, %p323_p2 }
  0x2e   :  { %247 = vmatpush3.bf16.msra.mxu0 %v244_v5 }
  0x2f   :  { %249 = vmatprep.subr.bf16.mxu0 %v248_v8 }
  0x32   :  { %251 = vmatpush3.bf16.msra.mxu0 %v248_v8 }
  0x33   :  { %253 = vmatprep.subr.bf16.mxu0 %v252_v12 }
  0x36   :  { %255 = vmatpush3.bf16.msra.mxu0 %v252_v12 }
  0x37   :  { %257 = vmatprep.subr.bf16.mxu0 %v256_v15 }
  0x3a   :  { %259 = vmatpush3.bf16.msra.mxu0 %v256_v15 }
  0x3b   :  { %261 = vmatprep.subr.bf16.mxu0 %v260_v18 }
  0x3e   :  { %263 = vmatpush3.bf16.msra.mxu0 %v260_v18 }
  0x3f   :  { %265 = vmatprep.subr.bf16.mxu0 %v264_v21 }
  0x42   :  { %267 = vmatpush3.bf16.msra.mxu0 %v264_v21 }
  0x43   :  { %269 = vmatprep.subr.bf16.mxu0 %v268_v24 }
  0x46   :  { %271 = vmatpush3.bf16.msra.mxu0 %v268_v24 }
  0x49   :  { %238 = vmatmul.mubr.f32.vlgmr.msra.gmra.mrb[0].mxu0 %v52_v25 }
 0x11c   :  { %v239_v26 = vpop.f32.mrb[0].mxu0 }
 0x11d   :  { %v135_v28 = vpop.f32.mrb[1].mxu0  ;;  %v161_v29 = vadd.f32 %v239_v26, %v186_v27 }
 0x11e   :  { %v160_v30 = vadd.f32 %v186_v27, %v135_v28 }
 0x11f   :  { %v163_v31 = vmul.f32 0.1, %v161_v29 }
 0x120   :  { %v162_v32 = vmul.f32 0.1, %v160_v30 }
 0x121   :  { %v165_v33 = vmax.f32 %v161_v29, %v163_v31 }
 0x122   :  { %v164_v34 = vmax.f32 %v160_v30, %v162_v32 }
 0x123   :  { %167 = vst [vmem:[#allocation7 + $0x8] sm:$0xff] %v165_v33 }
 0x124   :  { %166 = vst [vmem:[#allocation7] sm:$0xff] %v164_v34 }
 0x125   :  { %333 = shalt.err (!%p330_p6)
}
 0x126   :  { %s334_s15 = scalar_lea.hbm %s426_s3, 256 }
 0x127   :  { %p335_p7 = scmp.ne.s32.totalorder %s426_s3, %s334_s15  ;;  %p338_p8 = scmp.lt.u32.totalorder %s334_s15, %s426_s3 }
 0x129   :  { %p340_p9 = pnand %p338_p8, %p335_p7 }
 0x12b   :  { %343 = shalt.err (!%p340_p9)
}
 0x12c   :  { %179 = dma.vmem_to_hbm [thread:$0]  %s174_s12, 256, %s426_s3, [#allocation4], %s351_s22, %s351_s22, %s352_s23  }
 0x12d   :  { %348 = dma.done.wait [#allocation4], 256  }
 0x12e   :  { %349 = vsyncadd [#allocation4], 4294967040 }
 0x12f   :  { %183 = vsyncpa [#allocation3], 1 }
 0x130   :  { %184 = vsyncpa [#allocation6], 1 }
 0x131   :  { %185 = vsyncpa [#allocation4], 1 }

</bundles_post_ra>
